<compile_context>
chip_gen: v7x
topology: tpu7x:2x2x1
jax: 0.10.0
libtpu: 0.0.40
codegen_flags: <defaults>
</compile_context>

<pallas_src>
import math

import jax
import jax.numpy as jnp
from jax.experimental import pallas as pl
from jax.experimental.pallas import tpu as pltpu


# ----------------------------------------------------------------------------- kernels

def _mul_rowtile_kernel(x_ref, m_ref, o_ref):
    """x_ref/o_ref: (blk_rows, C); m_ref: (rep_rows, C), blk_rows % rep_rows == 0."""
    blk_rows = x_ref.shape[0]
    rep_rows = m_ref.shape[0]
    x = x_ref[...]
    m = m_ref[...]
    if blk_rows == rep_rows:
        o_ref[...] = x * m
    else:
        # Broadcast the small mask period up to the block; tile-aligned
        # (rep_rows % 8 == 0) so this is cheap and hides under the DMA.
        reps = blk_rows // rep_rows
        o_ref[...] = x * jnp.tile(m, (reps, 1))


def _mul_bcast_kernel(x_ref, m_ref, o_ref):
    """x_ref/o_ref: (1, t_blk, C); m_ref: (1, 1, C) broadcast over time."""
    o_ref[...] = x_ref[...] * m_ref[...]


# ----------------------------------------------------------------------------- wrappers

def _vmem_limit(bytes_needed):
    # Never go below the smallest known-safe scoped default; the computed need
    # already fits v7x's 64 MiB physical VMEM at the default 8 MiB block budget.
    return int(max(bytes_needed, 16 << 20))


def _locked_dropout_tdim0(x, mask_scaled, block_bytes):
    """x: (T, B, C); mask_scaled: (B, C), already scaled by 1/keep, dtype == x.dtype."""
    T, B, C = x.shape
    rows = T * B
    x2 = x.reshape(rows, C)                        # free row-major view
    itemsize = x.dtype.itemsize
    bytes_per_unit = B * C * itemsize              # one time step across the batch

    m = 8 // math.gcd(B, 8)                        # min time-steps so blk_rows % 8 == 0
    if T <= m:
        units = T                                  # single full-extent block (tiny input)
    else:
        units = min(max(1, block_bytes // max(1, bytes_per_unit)), T)
        units = max(m, (units // m) * m)
        if units >= T:
            # Budget covers everything: split into >= 2 roughly-equal grid
            # steps so both v7x TensorCores get work (no effect on v5e/v6e).
            units = max(m, (((T + 1) // 2) // m) * m)
    t_rep = m if T > m else T
    rep_rows = t_rep * B                           # mask repeat period in rows (<= lcm(B,8))
    blk_rows = units * B                           # multiple of rep_rows by construction

    # Mask replicated only to its small repeat period (a few KiB), NOT to a
    # full block: no block-sized extra HBM array, negligible VMEM.
    mask_rep = jnp.tile(mask_scaled, (t_rep, 1))   # (rep_rows, C), dtype == x.dtype

    blk_bytes = blk_rows * C * itemsize
    mask_bytes = rep_rows * C * itemsize
    # x-in (x2 buffers) + out (x2) + mask (x2, tiny) + one in-kernel broadcast
    # temporary + headroom.
    need = 5 * blk_bytes + 2 * mask_bytes + (4 << 20)

    out2 = pl.pallas_call(
        _mul_rowtile_kernel,
        out_shape=jax.ShapeDtypeStruct((rows, C), x.dtype),
        grid=(pl.cdiv(T, units),),
        in_specs=[
            pl.BlockSpec((blk_rows, C), lambda i: (i, 0)),
            pl.BlockSpec((rep_rows, C), lambda i: (0, 0)),   # constant -> fetched once
        ],
        out_specs=pl.BlockSpec((blk_rows, C), lambda i: (i, 0)),
        compiler_params=pltpu.CompilerParams(
            dimension_semantics=("parallel",),
            vmem_limit_bytes=_vmem_limit(need)),
    )(x2, mask_rep)
    return out2.reshape(T, B, C)


def _locked_dropout_tdim1(x, mask_scaled, block_bytes):
    """x: (B, T, C); mask_scaled: (B, C), already scaled by 1/keep, dtype == x.dtype."""
    B, T, C = x.shape
    itemsize = x.dtype.itemsize
    mask3 = mask_scaled[:, None, :]                # (B, 1, C)
    bytes_per_step = C * itemsize

    if T <= 8:
        t_blk = T                                  # full extent allowed
    else:
        t_blk = min(max(1, block_bytes // max(1, bytes_per_step)), T)
        t_blk = max(8, (t_blk // 8) * 8)
        if B == 1 and t_blk >= T:
            # Keep the total grid >= 2 steps for v7x megacore.
            t_blk = max(8, (((T + 1) // 2) // 8) * 8)
    grid = (B, pl.cdiv(T, t_blk))

    blk_bytes = t_blk * C * itemsize
    mask_bytes = C * itemsize
    need = 4 * blk_bytes + 2 * mask_bytes + (4 << 20)

    return pl.pallas_call(
        _mul_bcast_kernel,
        out_shape=jax.ShapeDtypeStruct(x.shape, x.dtype),
        grid=grid,
        in_specs=[
            pl.BlockSpec((1, t_blk, C), lambda b, t: (b, t, 0)),
            pl.BlockSpec((1, 1, C), lambda b, t: (b, 0, 0)),
        ],
        out_specs=pl.BlockSpec((1, t_blk, C), lambda b, t: (b, t, 0)),
        compiler_params=pltpu.CompilerParams(
            dimension_semantics=("parallel", "parallel"),
            vmem_limit_bytes=_vmem_limit(need)),
    )(x, mask3)


def locked_dropout(x, p, key, *, t_dim=0, training=True, block_bytes=8 << 20):
    """JAX/Pallas equivalent of LockedDropOut.forward(x, p).

    block_bytes bounds one x block; the actual VMEM footprint (double-buffered
    in + out blocks, the tiny mask period, and one in-kernel temporary) is
    ~5x block_bytes and is passed explicitly as vmem_limit_bytes.  The default
    8 MiB keeps that under ~48 MiB, safe on v7x (64 MiB physical) and well
    inside v5e/v6e (128 MiB).
    """
    if t_dim not in (0, 1):
        raise ValueError("t_dim must be 0 or 1")
    if not training or p <= 0.0:
        return x
    if p >= 1.0:
        # Deviation from PyTorch: mask/(1-p) there is 0/0 = NaN; return the
        # sane limit (everything dropped) instead.
        return jnp.zeros_like(x)

    keep = 1.0 - float(p)
    B = x.shape[1] if t_dim == 0 else x.shape[0]
    C = x.shape[2]

    # One Bernoulli(keep) mask over (B, C), inverted-dropout scaled by 1/keep
    # in f32, then stored in x.dtype (halves mask DMA/vreg traffic for bf16;
    # ~2^-9 rounding, matching PyTorch's in-dtype scaling).
    mask = (jax.random.bernoulli(key, keep, shape=(B, C)).astype(jnp.float32)
            / jnp.float32(keep)).astype(x.dtype)

    # TODO(synk): if C % 128 != 0 the output stores become masked partial
    # stores; pad/fold C to a multiple of 128 upstream for best DMA throughput.
    if t_dim == 0:
        return _locked_dropout_tdim0(x, mask, block_bytes)
    return _locked_dropout_tdim1(x, mask, block_bytes)


# ----------------------------------------------------------------------------- tests

def _reference(x, p, key, t_dim):
    keep = 1.0 - float(p)
    if t_dim == 0:
        B, C = x.shape[1], x.shape[2]
    else:
        B, C = x.shape[0], x.shape[2]
    mask = (jax.random.bernoulli(key, keep, (B, C)).astype(jnp.float32)
            / jnp.float32(keep)).astype(x.dtype)
    return x * (mask[None, :, :] if t_dim == 0 else mask[:, None, :])


def _check_semantics(out, x, keep, t_axis):
    out = out.astype(jnp.float32)
    x = x.astype(jnp.float32)
    scaled = x / keep
    is_zero = jnp.abs(out) < 1e-7
    is_scaled = jnp.abs(out - scaled) < 1e-5 * (1.0 + jnp.abs(scaled))
    assert bool(jnp.all(is_zero | is_scaled)), "values not in {0, x/keep}"
    if t_axis == 0:
        pattern = is_zero[0]
        assert bool(jnp.all(is_zero == pattern[None, :, :])), "mask not locked over T"
    else:
        pattern = is_zero[:, 0, :]
        assert bool(jnp.all(is_zero == pattern[:, None, :])), "mask not locked over T"


if __name__ == "__main__":
    key = jax.random.PRNGKey(0)
    kx0, kx1, km0, km1 = jax.random.split(key, 4)

    # --- t_dim = 0 : x is (T, B, C).  A small explicit block budget forces a
    # multi-step grid, a partial final block, and the in-kernel mask broadcast.
    T, B, C = 20, 2, 128
    p0 = 0.3
    x0 = jax.random.normal(kx0, (T, B, C), dtype=jnp.float32)
    out0 = jax.block_until_ready(
        locked_dropout(x0, p0, km0, t_dim=0, training=True,
                       block_bytes=8 * B * C * 4))     # 8 time-steps / block -> grid=(3,)
    _check_semantics(out0, x0, 1.0 - p0, t_axis=0)
    assert bool(jnp.allclose(out0, _reference(x0, p0, km0, 0), rtol=1e-6, atol=1e-6))

    # Default (large) block budget: grid still has >= 2 steps; identical result.
    out0d = jax.block_until_ready(locked_dropout(x0, p0, km0, t_dim=0, training=True))
    assert bool(jnp.all(out0d == out0))

    # Eval mode is identity.
    assert bool(jnp.all(locked_dropout(x0, p0, km0, t_dim=0, training=False) == x0))

    # --- t_dim = 1 : x is (B, T, C); grid over (B, T-blocks).
    B1, T1, C1 = 2, 16, 128
    p1 = 0.25
    x1 = jax.random.normal(kx1, (B1, T1, C1), dtype=jnp.float32)
    out1 = jax.block_until_ready(
        locked_dropout(x1, p1, km1, t_dim=1, training=True,
                       block_bytes=8 * C1 * 4))        # 8 time-steps / block -> grid=(2,2)
    _check_semantics(out1, x1, 1.0 - p1, t_axis=1)
    assert bool(jnp.allclose(out1, _reference(x1, p1, km1, 1), rtol=1e-6, atol=1e-6))

    # --- bf16 activations: mask is stored and multiplied in bf16.
    xb = jax.random.normal(kx0, (T, B, C), dtype=jnp.bfloat16)
    outb = jax.block_until_ready(locked_dropout(xb, p0, km0, t_dim=0, training=True))
    refb = _reference(xb, p0, km0, 0)
    a = outb.astype(jnp.float32)
    b = refb.astype(jnp.float32)
    rel = float(jnp.max(jnp.abs(a - b) / (1.0 + jnp.abs(b))))
    assert rel <= 2e-2, f"bf16 mismatch: {rel}"
    assert outb.dtype == jnp.bfloat16

    print("KERNEL_OK")
</pallas_src>

<mosaic_0001>
module attributes {stable_mosaic.version = 11 : i64} {
  func.func @_mul_rowtile_kernel(%arg0: i32, %arg1: memref<16x128xf32, #tpu.memory_space<vmem>>, %arg2: memref<8x128xf32, #tpu.memory_space<vmem>>, %arg3: memref<16x128xf32, #tpu.memory_space<vmem>>) attributes {dimension_semantics = [#tpu.dimension_semantics<parallel>], iteration_bounds = array<i64: 3>, scalar_prefetch = 0 : i64, scratch_operands = 0 : i64, tpu.core_type = #tpu.core_type<tc>, window_params = [{transform_indices = @transform_0, window_bounds = array<i64: 16, 128>}, {pipeline_mode = #tpu.pipeline_mode<synchronous>, transform_indices = @transform_1, window_bounds = array<i64: 8, 128>}, {transform_indices = @transform_2, window_bounds = array<i64: 16, 128>}]} {
    %c0 = arith.constant 0 : index
    %c0_0 = arith.constant 0 : index
    %0 = vector.load %arg1[%c0, %c0_0] : memref<16x128xf32, #tpu.memory_space<vmem>>, vector<16x128xf32>
    %c0_1 = arith.constant 0 : index
    %c0_2 = arith.constant 0 : index
    %1 = vector.load %arg2[%c0_1, %c0_2] : memref<8x128xf32, #tpu.memory_space<vmem>>, vector<8x128xf32>
    %2 = tpu.concatenate %1, %1 in 0 : vector<8x128xf32>, vector<8x128xf32> -> vector<16x128xf32>
    %3 = arith.mulf %0, %2 : vector<16x128xf32>
    %c0_3 = arith.constant 0 : index
    %c0_4 = arith.constant 0 : index
    %4 = vector.load %arg3[%c0_3, %c0_4] : memref<16x128xf32, #tpu.memory_space<vmem>>, vector<16x128xf32>
    tpu.vector_store %arg3[%c0_3, %c0_4], %3 {strides = array<i32>} : memref<16x128xf32, #tpu.memory_space<vmem>>, vector<16x128xf32>,
    return
  }
  func.func @transform_0(%arg0: i32) -> (i32, i32) {
    %c0_i32 = arith.constant 0 : i32
    %c0_i32_0 = arith.constant 0 : i32
    return %arg0, %c0_i32 : i32, i32
  }
  func.func @transform_1(%arg0: i32) -> (i32, i32) {
    %c0_i32 = arith.constant 0 : i32
    %c0_i32_0 = arith.constant 0 : i32
    %c0_i32_1 = arith.constant 0 : i32
    return %c0_i32, %c0_i32_0 : i32, i32
  }
  func.func @transform_2(%arg0: i32) -> (i32, i32) {
    %c0_i32 = arith.constant 0 : i32
    %c0_i32_0 = arith.constant 0 : i32
    return %arg0, %c0_i32 : i32, i32
  }
}

</mosaic_0001>

<bundles_post_ra>
// kernel: tpu_custom_call.1
= control target key start
LH: loop header
LB: loop body
LE: loop exit
PB: predicated region body
PF: predicated region fallthrough
CT: control target
= control target key end

     0   :  { %7 = vsyncpa [#allocation3], 0  ;;  %s740_s0 = inlined_call_operand.hbm [shape: f32[40,128], index: 0, kind: input, shape index: {}]   ;;  %s741_s1 = inlined_call_operand.hbm [shape: f32[8,128], index: 1, kind: input, shape index: {}]   ;;  %s742_s2 = inlined_call_operand.hbm [shape: f32[40,128], index: 2, kind: output, shape index: {}]  }
   0x1   :  { %9 = vsyncpa [#allocation3 + $0x1], 0 }
   0x2   :  { %10 = vsyncpa [#allocation6], 0 }
   0x3   :  { %11 = vsyncpa [#allocation4], 0 }
   0x4   :  { %13 = vsyncpa [#allocation4 + $0x1], 0  ;;  %s531_s9 = smov 0   ;;  %s533_s10 = smov 0  }
   0x5   :  { %s535_s11 = smov 0   ;;  %s537_s12 = smov 0  }
   0x6 LB: > { %s552_s13 = sadd.s32 4294967295, %s507_s12   ;;  %s301_s14 = sadd.s32 4294967294, %s507_s12   ;;  %s507_s12 = sphi %s537_s12, %s762_s12   ;;  %s503_s11 = sphi %s535_s11, %s761_s11   ;;  %s499_s10 = sphi %s533_s10, %s760_s10   ;;  %s495_s9 = sphi %s531_s9, %s759_s9  }
   0x7   : > { %s556_s15 = sadd.s32 1, %s507_s12   ;;  %s26_s16 = sadd.s32 1, %s503_s11 }
   0x8   : > { %s23_s17 = ssub.s32 %s507_s12, %s556_s15  ;;  %p33_p0 = scmp.ne.s32.totalorder %s503_s11, %s499_s10 }
   0x9   : > { %p24_p1 = scmp.eq.s32.totalorder %s23_s17, 0  ;;  %p34_p2 = scmp.eq.s32.totalorder %s507_s12, 0 }
   0xa   : > { %p39_p3 = scmp.ne.s32.totalorder %s499_s10, %s495_s9  ;;  %p743_p4 = scmp.eq.s32.totalorder %s552_s13, 0 }
   0xb   : > { %s568_s18 = scalar_select %p24_p1, %s503_s11, %s26_s16  }
   0xc   : > { %p570_p5 = por %p34_p2, %p33_p0  ;;  %p576_p6 = por %p743_p4, %p39_p3 }
   0xd   : > { %p84_p7 = scmp.eq.s32.totalorder %s552_s13, 2  ;;  %p90_p8 = scmp.eq.s32.totalorder %s301_s14, 2 }
   0xe   : > { %s746_s19 = scalar_select %p570_p5, 1, 0 }
   0xf   : > { %s747_s20 = scalar_select %p576_p6, 1, 0 }
  0x10   : > { %p302_p9 = scmp.ge.s32.totalorder %s507_s12, 1  ;;  %p97_p10 = scmp.lt.s32.totalorder %s507_s12, 4 }
  0x11   : > { %p583_p11 = por %p84_p7, %p33_p0  ;;  %p587_p12 = por %p90_p8, %p39_p3 }
  0x12   : > { %p591_p13 = pnand %p302_p9, %p97_p10  ;;  %s509_s24 = smov [#allocation5]  }
  0x13   : > { %s748_s21 = scalar_select %p583_p11, 1, 0 }
  0x14   : > { %s749_s22 = scalar_select %p587_p12, 1, 0 }
  0x15   : > { %s750_s23 = scalar_select %p591_p13, 1, 0 }
  0x16   : > { %p333_p1 = pneg %p591_p13  ;;  %s110_s25 = sshll.u32 %s509_s24, 4  ;;  %s111_s25 = int_to_ptr.vmem [resolvable:$true] %s110_s25 }
  0x17   : > { %s381_s29 = scalar_lea.hbm %s741_s1, 128 }
  0x18   : > { %p599_p2 = pnand %p333_p1, %p743_p4  ;;  %p382_p0 = scmp.ne.s32.totalorder %s741_s1, %s381_s29 }
  0x19   : > { %p388_p9 = scmp.lt.u32.totalorder %s381_s29, %s741_s1 }
  0x1a   : > { %p383_p3 = pneg %p599_p2 }
  0x1c   : > { %p384_p7 = pnand %p383_p3, %p382_p0 }
  0x1e   : > { %p385_p8 = pneg %p384_p7 }
  0x20   : > { %p390_p10 = pnand %p388_p9, %p385_p8 }
  0x22   : > { %393 = shalt.err (!%p390_p10)
}
  0x23   : > { %s394_s6 = scalar_lea.vmem %s111_s25, 128  ;;  %p402_p11 = scmp.lt.s32.totalorder %s111_s25, %s111_s25 }
  0x24   : > { %p395_p1 = scmp.ne.s32.totalorder %s111_s25, %s394_s6  ;;  %p403_p6 = scmp.lt.s32.totalorder %s394_s6, %s394_s6 }
  0x26   : > { %p397_p4 = pnand %p395_p1, %p383_p3  ;;  %p404_p13 = por %p403_p6, %p402_p11 }
  0x28   : > { %p398_p12 = pneg %p397_p4 }
  0x2a   : > { %p405_p5 = pnand %p404_p13, %p398_p12 }
  0x2c   : > { %408 = shalt.err (!%p405_p5)
}
  0x2d   : > { %336 = dma.hbm_to_vmem [thread:$0]  (!%p599_p2), %s741_s1, 128, %s111_s25, [#allocation6]  }
  0x2e   : > { %p304_p0 = scmp.ge.s32.totalorder %s507_s12, 3 }
  0x2f   : > { %p752_p7 = scmp.ne.s32.totalorder (!%p304_p0), %s746_s19, 0 }
  0x30   : > { %117 = sbr.rel (%p304_p0) target bundleno = 90 (0x5a), region = 20 }
  0x37   : > { %120 = sbr.rel (!%p752_p7) target bundleno = 90 (0x5a), region = 24  ;;  %s121_s14 = sand.u32 (%p752_p7), 1, %s503_s11  }
  0x38   : > { %s306_s16 = sshll.u32 (%p752_p7), %s507_s12, 1  ;;  %s305_s17 = sshll.u32 (%p752_p7), %s121_s14, 4 }
  0x39   : > { %s127_s24 = ssub.s32 (%p752_p7), 5, %s306_s16  ;;  %s627_s28 = scalar_lea.sflag (%p752_p7), [#allocation3], %s121_s14 }
  0x3a   : > { %p128_p4 = scmp.lt.s32.totalorder (%p752_p7), %s127_s24, 2  ;;  %s125_s25 = scalar_lea.vmem (%p752_p7), [#allocation2], %s305_s17 }
  0x3e   : > { %s764_s24 = smov (!%p128_p4, %s127_s24), 2 }
  0x3f   : > { %s624_s27 = sshll.u32 %s764_s24, 7 }
  0x40   : > { %s132_s26 = ssub.s32 256, %s624_s27 }
  0x41   : > { %133 = vsyncadd %s627_s28, %s132_s26  ;;  %p308_p5 = scmp.ne.s32.totalorder %s624_s27, 0  ;;  %s325_s19 = sshll.u32 %s507_s12, 8 }
  0x42   : > { %s635_s3 = scalar_lea.hbm %s740_s0, %s325_s19  ;;  %s138_s4 = sshll.u32 %s125_s25, 4  ;;  %s637_s4 = int_to_ptr.vmem [resolvable:$true] %s138_s4 }
  0x43   : > { %s409_s5 = scalar_lea.hbm %s635_s3, %s624_s27  ;;  %s413_s8 = scalar_lea.hbm %s740_s0, 640 }
  0x44   : > { %p410_p6 = scmp.ne.s32.totalorder %s635_s3, %s409_s5  ;;  %p414_p13 = scmp.lt.u32.totalorder %s635_s3, %s740_s0 }
  0x45   : > { %p415_p2 = scmp.lt.u32.totalorder %s413_s8, %s409_s5  ;;  %p417_p8 = scmp.lt.u32.totalorder %s409_s5, %s635_s3 }
  0x46   : > { %p411_p11 = pnand %p410_p6, %p308_p5 }
  0x47   : > { %p416_p3 = por %p415_p2, %p414_p13 }
  0x48   : > { %p412_p12 = pneg %p411_p11 }
  0x49   : > { %p418_p9 = por %p417_p8, %p416_p3 }
  0x4b   : > { %p419_p10 = pnand %p418_p9, %p412_p12 }
  0x4d   : > { %422 = shalt.err (!%p419_p10)
}
  0x4e   : > { %s423_s17 = scalar_lea.vmem %s637_s4, %s624_s27  ;;  %s510_s24 = smov [#allocation2]  }
  0x4f   : > { %p424_p1 = scmp.ne.s32.totalorder %s637_s4, %s423_s17  ;;  %s427_s26 = sshll.u32 %s510_s24, 4  ;;  %s428_s26 = int_to_ptr.vmem [resolvable:$false] %s427_s26 }
  0x50   : > { %s429_s25 = scalar_lea.vmem %s428_s26, 512  ;;  %p430_p4 = scmp.lt.s32.totalorder %s637_s4, %s428_s26 }
  0x51   : > { %p425_p0 = pnand %p424_p1, %p308_p5  ;;  %p431_p6 = scmp.lt.s32.totalorder %s429_s25, %s423_s17 }
  0x53   : > { %p426_p7 = pneg %p425_p0  ;;  %p432_p11 = por %p431_p6, %p430_p4 }
  0x55   : > { %p433_p13 = pnand %p432_p11, %p426_p7 }
  0x57   : > { %436 = shalt.err (!%p433_p13)
}
  0x58   : > { %s511_s19 = smov 128   ;;  %s512_s29 = smov 8  }
  0x59   : > { %144 = dma.hbm_to_vmem [thread:$0]  (%p308_p5), %s635_s3, %s624_s27, %s637_s4, %s627_s28, %s511_s19, %s511_s19, %s512_s29  }
  0x5a PF: > { %p753_p12 = scmp.ne.s32.totalorder %s750_s23, 0 }
  0x5b   : > { %s667_s30 = sand.u32 (!%p753_p12), 1, %s499_s10   ;;  %p754_p2 = scmp.ne.s32.totalorder (!%p753_p12), %s747_s20, 0 }
  0x5c   : > { %150 = sbr.rel (%p753_p12) target bundleno = 141 (0x8d), region = 28  ;;  %s313_s5 = sshll.u32 (!%p753_p12), %s667_s30, 4 }
  0x5d   : > { %s153_s6 = scalar_lea.sflag (!%p753_p12), [#allocation3], %s667_s30  ;;  %s156_s7 = scalar_lea.vmem (!%p753_p12), [#allocation2], %s313_s5 }
  0x63   : > { %482 = dma.done.wait (%p754_p2), %s153_s6, 256  }
  0x64   : > { %484 = vsyncadd (%p754_p2), %s153_s6, 4294967040  ;;  %p755_p5 = scmp.eq.s32.totalorder %s552_s13, 0 }
  0x66   : > { %486 = dma.done.wait (%p755_p5), [#allocation6], 128   ;;  %p756_p3 = pmov %p755_p5 }
  0x67   : > { %v191_v0 = vld [vmem:[%s156_s7] sm:$0xff]  ;;  %v192_v2 = vld [vmem:[%s156_s7 + $0x8] sm:$0xff]  ;;  %s180_s23 = scalar_lea.vmem [#allocation7], %s313_s5  ;;  %s199_s27 = scalar_lea.sflag [#allocation4], %s667_s30 }
  0x68   : > { %488 = vsyncadd (%p756_p3), [#allocation6], 4294967168  ;;  %v193_v1 = vld [vmem:[#allocation5] sm:$0xff]  ;;  %p757_p8 = scmp.ne.s32.totalorder %s748_s21, 0 }
  0x69   : > { %v194_v3 = vmul.f32 %v193_v1, %v191_v0  ;;  %v195_v4 = vmul.f32 %v193_v1, %v192_v2  ;;  %s317_s20 = sshll.u32 (%p757_p8), %s552_s13, 1 }
  0x6a   : > { %205 = sbr.rel (!%p757_p8) target bundleno = 141 (0x8d), region = 40  ;;  %s207_s28 = ssub.s32 (%p757_p8), 5, %s317_s20 }
  0x6b   : > { %196 = vst [vmem:[%s180_s23] sm:$0xff] %v194_v3  ;;  %197 = vst [vmem:[%s180_s23 + $0x8] sm:$0xff] %v195_v4  ;;  %p208_p9 = scmp.lt.s32.totalorder (%p757_p8), %s207_s28, 2 }
  0x71   : > { %s766_s28 = smov (!%p208_p9, %s207_s28), 2 }
  0x72   : > { %s683_s3 = sshll.u32 %s766_s28, 7 }
  0x73   : > { %s212_s4 = ssub.s32 256, %s683_s3 }
  0x74   : > { %213 = vsyncadd %s199_s27, %s212_s4  ;;  %p319_p10 = scmp.ne.s32.totalorder %s683_s3, 0  ;;  %s326_s8 = sshll.u32 %s552_s13, 8 }
  0x75   : > { %s693_s16 = scalar_lea.hbm %s742_s2, %s326_s8  ;;  %s218_s17 = sshll.u32 %s180_s23, 4  ;;  %s695_s17 = int_to_ptr.vmem [resolvable:$true] %s218_s17 }
  0x76   : > { %s437_s24 = scalar_lea.vmem %s695_s17, %s683_s3  ;;  %s513_s26 = smov [#allocation7]  }
  0x77   : > { %p438_p1 = scmp.ne.s32.totalorder %s695_s17, %s437_s24  ;;  %s441_s25 = sshll.u32 %s513_s26, 4  ;;  %s442_s25 = int_to_ptr.vmem [resolvable:$false] %s441_s25 }
  0x78   : > { %s443_s13 = scalar_lea.vmem %s442_s25, 512  ;;  %p444_p4 = scmp.lt.s32.totalorder %s695_s17, %s442_s25 }
  0x79   : > { %p439_p0 = pnand %p438_p1, %p319_p10  ;;  %p445_p6 = scmp.lt.s32.totalorder %s443_s13, %s437_s24 }
  0x7b   : > { %p440_p7 = pneg %p439_p0  ;;  %p446_p11 = por %p445_p6, %p444_p4 }
  0x7d   : > { %p447_p13 = pnand %p446_p11, %p440_p7 }
  0x7f   : > { %450 = shalt.err (!%p447_p13)
}
  0x80   : > { %s451_s19 = scalar_lea.hbm %s693_s16, %s683_s3  ;;  %s455_s6 = scalar_lea.hbm %s742_s2, 640 }
  0x81   : > { %p452_p12 = scmp.ne.s32.totalorder %s693_s16, %s451_s19  ;;  %p456_p3 = scmp.lt.u32.totalorder %s693_s16, %s742_s2 }
  0x82   : > { %p457_p8 = scmp.lt.u32.totalorder %s455_s6, %s451_s19  ;;  %p459_p1 = scmp.lt.u32.totalorder %s451_s19, %s693_s16 }
  0x83   : > { %p453_p2 = pnand %p452_p12, %p319_p10 }
  0x84   : > { %p458_p9 = por %p457_p8, %p456_p3 }
  0x85   : > { %p454_p5 = pneg %p453_p2 }
  0x86   : > { %p460_p0 = por %p459_p1, %p458_p9 }
  0x88   : > { %p461_p7 = pnand %p460_p0, %p454_p5 }
  0x8a   : > { %464 = shalt.err (!%p461_p7)
}
  0x8b   : > { %s514_s20 = smov 128   ;;  %s515_s28 = smov 8  }
  0x8c   : > { %224 = dma.vmem_to_hbm [thread:$0]  (%p319_p10), %s695_s17, %s683_s3, %s693_s16, %s199_s27, %s514_s20, %s514_s20, %s515_s28  }
  0x8d PF: > { %p343_p4 = scmp.ge.s32.totalorder %s507_s12, 2  ;;  %s233_s4 = sand.u32 1, %s495_s9  }
  0x8e   : > { %p758_p6 = scmp.ne.s32.totalorder %s749_s22, 0  ;;  %s234_s8 = scalar_lea.sflag [#allocation4], %s233_s4 }
  0x90   : > { %p338_p11 = pnand %p343_p4, %p758_p6 }
  0x92   : > { %490 = dma.done.wait (!%p338_p11), %s234_s8, 256  }
  0x93   : > { %492 = vsyncadd (!%p338_p11), %s234_s8, 4294967040  ;;  %p16_p13 = scmp.ge.s32.totalorder %s556_s15, 5   ;;  %s759_s9 = smov %s499_s10 }
  0x94   : > { %s760_s10 = smov %s503_s11  ;;  %s761_s11 = smov %s568_s18 }
  0x95   : > { %s762_s12 = smov %s556_s15  ;;  %18 = sbr.rel (!%p16_p13) target bundleno = 6 (0x6), region = 77 }
  0x9c   :  { %239 = vsyncpa [#allocation3], 1 }
  0x9d   :  { %241 = vsyncpa [#allocation3 + $0x1], 1 }
  0x9e   :  { %242 = vsyncpa [#allocation6], 1 }
  0x9f   :  { %243 = vsyncpa [#allocation4], 1 }
  0xa0   :  { %245 = vsyncpa [#allocation4 + $0x1], 1 }

</bundles_post_ra>
